<compile_context>
chip_gen: v6e
topology: v6e:2x2x1
jax: 0.10.0
libtpu: 0.0.40
codegen_flags: <defaults>
</compile_context>

<pallas_src>
import functools

import jax
import jax.numpy as jnp
from jax.experimental import pallas as pl
from jax.experimental.pallas import tpu as pltpu

LANE = 128       # lane width (last dim)
SUBLANE_BF16 = 16  # bf16 sublane packing (second-to-last dim)


def _round_up(x: int, m: int) -> int:
    return (x + m - 1) // m * m


def _policy_kernel(obs_ref, w1_ref, b1_ref, w2_ref, b2_ref, w3_ref, b3_ref, out_ref):
    """Whole MLP for one batch tile; weights stay VMEM-resident across tiles."""
    x = obs_ref[...].astype(jnp.bfloat16)                     # (TB, obs_dim)

    # Layer 1: bf16 x bf16 -> f32 acc, bias + ReLU in f32, carry bf16 onward.
    h1 = jnp.dot(x, w1_ref[...], preferred_element_type=jnp.float32) + b1_ref[...]
    h1 = jnp.maximum(h1, 0.0).astype(jnp.bfloat16)

    # Layer 2
    h2 = jnp.dot(h1, w2_ref[...], preferred_element_type=jnp.float32) + b2_ref[...]
    h2 = jnp.maximum(h2, 0.0).astype(jnp.bfloat16)

    # Output layer + Tanh (f32, lane-dense ACT_PAD-wide slab)
    a = jnp.dot(h2, w3_ref[...], preferred_element_type=jnp.float32) + b3_ref[...]
    out_ref[...] = jnp.tanh(a)


def prepare_params(params):
    """One-time prep: bf16 weights, [1, out] f32 biases, lane-padded output layer.

    Keep the result as model state; do NOT rebuild it per forward call.
    """
    w1, b1, w2, b2, w3, b3 = params
    h2_dim, act_dim = w3.shape
    act_pad = _round_up(act_dim, LANE)

    w1_p = w1.astype(jnp.bfloat16)                             # (obs_dim, 256)
    w2_p = w2.astype(jnp.bfloat16)                             # (256, 256)
    w3_p = jnp.zeros((h2_dim, act_pad), jnp.bfloat16).at[:, :act_dim].set(
        w3.astype(jnp.bfloat16))                               # (256, act_pad)
    b1_p = b1.reshape(1, -1).astype(jnp.float32)
    b2_p = b2.reshape(1, -1).astype(jnp.float32)
    b3_p = jnp.zeros((1, act_pad), jnp.float32).at[:, :act_dim].set(
        b3.reshape(1, act_dim).astype(jnp.float32))
    return (w1_p, b1_p, w2_p, b2_p, w3_p, b3_p), act_dim


@functools.partial(jax.jit, static_argnames=("act_dim", "block_b"))
def deterministic_policy_forward(obs, prepared, *, act_dim: int, block_b: int = 256):
    """obs: [B, obs_dim] f32 (native shape). prepared: output of prepare_params."""
    w1_p, b1_p, w2_p, b2_p, w3_p, b3_p = prepared
    B, obs_dim = obs.shape
    h1_dim = w1_p.shape[1]
    h2_dim = w2_p.shape[1]
    act_pad = w3_p.shape[1]

    # Batch tile: multiple of 16 (bf16 sublane packing); keep >= 2 grid steps
    # when the batch allows it so both v7x TensorCores get work.
    tb = _round_up(max(min(block_b, B), SUBLANE_BF16), SUBLANE_BF16)
    if B >= 2 * SUBLANE_BF16 and pl.cdiv(B, tb) < 2:
        tb = _round_up(pl.cdiv(B, 2), SUBLANE_BF16)
    grid = (pl.cdiv(B, tb),)

    def tiled(shape):      # obs / out: advance along batch with the grid
        return pl.BlockSpec(shape, lambda i: (i, 0))

    def resident(shape):   # weights / biases: same block every step (DMA once)
        return pl.BlockSpec(shape, lambda i: (0, 0))

    flops = 2 * B * (obs_dim * h1_dim + h1_dim * h2_dim + h2_dim * act_pad)
    bytes_accessed = (
        obs.size * 4
        + (w1_p.size + w2_p.size + w3_p.size) * 2
        + (b1_p.size + b2_p.size + b3_p.size) * 4
        + B * act_pad * 4
    )

    out_pad = pl.pallas_call(
        _policy_kernel,
        out_shape=jax.ShapeDtypeStruct((B, act_pad), jnp.float32),
        grid=grid,
        in_specs=[
            tiled((tb, obs_dim)),                # last dim == full array dim: legal
            resident(w1_p.shape), resident(b1_p.shape),
            resident(w2_p.shape), resident(b2_p.shape),
            resident(w3_p.shape), resident(b3_p.shape),
        ],
        out_specs=tiled((tb, act_pad)),
        compiler_params=pltpu.CompilerParams(
            dimension_semantics=("parallel",),
        ),
        cost_estimate=pl.CostEstimate(
            flops=flops,
            transcendentals=B * act_pad,
            bytes_accessed=bytes_accessed,
        ),
    )(obs, w1_p, b1_p, w2_p, b2_p, w3_p, b3_p)

    # strip action-lane padding (batch padding handled by the grid's masked writes)
    return out_pad[:, :act_dim]


def init_params(key, obs_dim, hidden_dims, act_dim):
    """PyTorch-Linear-style uniform init; weights stored as [in, out] f32."""
    dims = [obs_dim] + list(hidden_dims) + [act_dim]
    params = []
    for i in range(len(dims) - 1):
        fan_in, fan_out = dims[i], dims[i + 1]
        key, kw, kb = jax.random.split(key, 3)
        bound = 1.0 / jnp.sqrt(fan_in)
        w = jax.random.uniform(kw, (fan_in, fan_out), jnp.float32, -bound, bound)
        b = jax.random.uniform(kb, (fan_out,), jnp.float32, -bound, bound)
        params.extend([w, b])
    return tuple(params)


def reference_forward(obs, params):
    """Pure-JAX reference mirroring the kernel's bf16 rounding of matmul inputs."""
    w1, b1, w2, b2, w3, b3 = params
    r = lambda x: x.astype(jnp.bfloat16).astype(jnp.float32)
    h1 = jnp.maximum(r(obs) @ r(w1) + b1, 0.0)
    h2 = jnp.maximum(r(h1) @ r(w2) + b2, 0.0)
    return jnp.tanh(r(h2) @ r(w3) + b3)


if __name__ == "__main__":
    key = jax.random.PRNGKey(0)

    batch = 48                  # non-multiple of the tile: exercises masked last block
    obs_dim = 8
    hidden_dims = [256, 256]    # real DeterministicPolicy width
    act_dim = 4

    key, k_obs, k_params = jax.random.split(key, 3)
    obs = jax.random.normal(k_obs, (batch, obs_dim), jnp.float32)
    params = init_params(k_params, obs_dim, hidden_dims, act_dim)

    # One-time parameter prep (kept as model state; not in the hot path).
    prepared, act_dim_out = prepare_params(params)
    prepared = jax.block_until_ready(prepared)

    actions = deterministic_policy_forward(obs, prepared, act_dim=act_dim_out)
    actions = jax.block_until_ready(actions)

    ref = reference_forward(obs, params)
    assert actions.shape == (batch, act_dim)
    assert jnp.allclose(actions, ref, atol=1e-3, rtol=1e-3), "mismatch vs reference"

    print("KERNEL_OK")
</pallas_src>

<mosaic_0001>
module attributes {stable_mosaic.version = 11 : i64} {
  func.func @_policy_kernel(%arg0: i32, %arg1: memref<32x8xf32, #tpu.memory_space<vmem>>, %arg2: memref<8x256xbf16, #tpu.memory_space<vmem>>, %arg3: memref<1x256xf32, #tpu.memory_space<vmem>>, %arg4: memref<256x256xbf16, #tpu.memory_space<vmem>>, %arg5: memref<1x256xf32, #tpu.memory_space<vmem>>, %arg6: memref<256x128xbf16, #tpu.memory_space<vmem>>, %arg7: memref<1x128xf32, #tpu.memory_space<vmem>>, %arg8: memref<32x128xf32, #tpu.memory_space<vmem>>) attributes {dimension_semantics = [#tpu.dimension_semantics<parallel>], iteration_bounds = array<i64: 2>, scalar_prefetch = 0 : i64, scratch_operands = 0 : i64, tpu.core_type = #tpu.core_type<tc>, window_params = [{transform_indices = @transform_0, window_bounds = array<i64: 32, 8>}, {pipeline_mode = #tpu.pipeline_mode<synchronous>, transform_indices = @transform_1, window_bounds = array<i64: 8, 256>}, {pipeline_mode = #tpu.pipeline_mode<synchronous>, transform_indices = @transform_2, window_bounds = array<i64: 1, 256>}, {pipeline_mode = #tpu.pipeline_mode<synchronous>, transform_indices = @transform_3, window_bounds = array<i64: 256, 256>}, {pipeline_mode = #tpu.pipeline_mode<synchronous>, transform_indices = @transform_4, window_bounds = array<i64: 1, 256>}, {pipeline_mode = #tpu.pipeline_mode<synchronous>, transform_indices = @transform_5, window_bounds = array<i64: 256, 128>}, {pipeline_mode = #tpu.pipeline_mode<synchronous>, transform_indices = @transform_6, window_bounds = array<i64: 1, 128>}, {transform_indices = @transform_7, window_bounds = array<i64: 32, 128>}]} {
    %c0 = arith.constant 0 : index
    %c0_0 = arith.constant 0 : index
    %0 = vector.load %arg1[%c0, %c0_0] : memref<32x8xf32, #tpu.memory_space<vmem>>, vector<32x8xf32>
    %1 = arith.truncf %0 : vector<32x8xf32> to vector<32x8xbf16>
    %c0_1 = arith.constant 0 : index
    %c0_2 = arith.constant 0 : index
    %2 = vector.load %arg2[%c0_1, %c0_2] : memref<8x256xbf16, #tpu.memory_space<vmem>>, vector<8x256xbf16>
    %cst = arith.constant dense<0.000000e+00> : vector<32x256xf32>
    %3 = tpu.matmul %1, %2, %cst {dimension_numbers = #tpu.dot_dimension_numbers<[1], [0], [0], [1], [0, 0, 1, 1], [], []>} : vector<32x8xbf16>, vector<8x256xbf16>, vector<32x256xf32> -> vector<32x256xf32>
    %c0_3 = arith.constant 0 : index
    %c0_4 = arith.constant 0 : index
    %4 = vector.load %arg3[%c0_3, %c0_4] : memref<1x256xf32, #tpu.memory_space<vmem>>, vector<1x256xf32>
    %5 = vector.broadcast %4 : vector<1x256xf32> to vector<32x256xf32>
    %6 = arith.addf %3, %5 : vector<32x256xf32>
    %cst_5 = arith.constant 0.000000e+00 : f32
    %7 = vector.broadcast %cst_5 : f32 to vector<32x256xf32>
    %8 = arith.maximumf %6, %7 : vector<32x256xf32>
    %9 = arith.truncf %8 : vector<32x256xf32> to vector<32x256xbf16>
    %c0_6 = arith.constant 0 : index
    %c0_7 = arith.constant 0 : index
    %10 = vector.load %arg4[%c0_6, %c0_7] : memref<256x256xbf16, #tpu.memory_space<vmem>>, vector<256x256xbf16>
    %cst_8 = arith.constant dense<0.000000e+00> : vector<32x256xf32>
    %11 = tpu.matmul %9, %10, %cst_8 {dimension_numbers = #tpu.dot_dimension_numbers<[1], [0], [0], [1], [0, 0, 1, 1], [], []>} : vector<32x256xbf16>, vector<256x256xbf16>, vector<32x256xf32> -> vector<32x256xf32>
    %c0_9 = arith.constant 0 : index
    %c0_10 = arith.constant 0 : index
    %12 = vector.load %arg5[%c0_9, %c0_10] : memref<1x256xf32, #tpu.memory_space<vmem>>, vector<1x256xf32>
    %13 = vector.broadcast %12 : vector<1x256xf32> to vector<32x256xf32>
    %14 = arith.addf %11, %13 : vector<32x256xf32>
    %cst_11 = arith.constant 0.000000e+00 : f32
    %15 = vector.broadcast %cst_11 : f32 to vector<32x256xf32>
    %16 = arith.maximumf %14, %15 : vector<32x256xf32>
    %17 = arith.truncf %16 : vector<32x256xf32> to vector<32x256xbf16>
    %c0_12 = arith.constant 0 : index
    %c0_13 = arith.constant 0 : index
    %18 = vector.load %arg6[%c0_12, %c0_13] : memref<256x128xbf16, #tpu.memory_space<vmem>>, vector<256x128xbf16>
    %cst_14 = arith.constant dense<0.000000e+00> : vector<32x128xf32>
    %19 = tpu.matmul %17, %18, %cst_14 {dimension_numbers = #tpu.dot_dimension_numbers<[1], [0], [0], [1], [0, 0, 1, 1], [], []>} : vector<32x256xbf16>, vector<256x128xbf16>, vector<32x128xf32> -> vector<32x128xf32>
    %c0_15 = arith.constant 0 : index
    %c0_16 = arith.constant 0 : index
    %20 = vector.load %arg7[%c0_15, %c0_16] : memref<1x128xf32, #tpu.memory_space<vmem>>, vector<1x128xf32>
    %21 = vector.broadcast %20 : vector<1x128xf32> to vector<32x128xf32>
    %22 = arith.addf %19, %21 : vector<32x128xf32>
    %23 = math.tanh %22 : vector<32x128xf32>
    %c0_17 = arith.constant 0 : index
    %c0_18 = arith.constant 0 : index
    %24 = vector.load %arg8[%c0_17, %c0_18] : memref<32x128xf32, #tpu.memory_space<vmem>>, vector<32x128xf32>
    tpu.vector_store %arg8[%c0_17, %c0_18], %23 {strides = array<i32>} : memref<32x128xf32, #tpu.memory_space<vmem>>, vector<32x128xf32>,
    return
  }
  func.func @transform_0(%arg0: i32) -> (i32, i32) {
    %c0_i32 = arith.constant 0 : i32
    %c0_i32_0 = arith.constant 0 : i32
    return %arg0, %c0_i32 : i32, i32
  }
  func.func @transform_1(%arg0: i32) -> (i32, i32) {
    %c0_i32 = arith.constant 0 : i32
    %c0_i32_0 = arith.constant 0 : i32
    %c0_i32_1 = arith.constant 0 : i32
    return %c0_i32, %c0_i32_0 : i32, i32
  }
  func.func @transform_2(%arg0: i32) -> (i32, i32) {
    %c0_i32 = arith.constant 0 : i32
    %c0_i32_0 = arith.constant 0 : i32
    %c0_i32_1 = arith.constant 0 : i32
    return %c0_i32, %c0_i32_0 : i32, i32
  }
  func.func @transform_3(%arg0: i32) -> (i32, i32) {
    %c0_i32 = arith.constant 0 : i32
    %c0_i32_0 = arith.constant 0 : i32
    %c0_i32_1 = arith.constant 0 : i32
    return %c0_i32, %c0_i32_0 : i32, i32
  }
  func.func @transform_4(%arg0: i32) -> (i32, i32) {
    %c0_i32 = arith.constant 0 : i32
    %c0_i32_0 = arith.constant 0 : i32
    %c0_i32_1 = arith.constant 0 : i32
    return %c0_i32, %c0_i32_0 : i32, i32
  }
  func.func @transform_5(%arg0: i32) -> (i32, i32) {
    %c0_i32 = arith.constant 0 : i32
    %c0_i32_0 = arith.constant 0 : i32
    %c0_i32_1 = arith.constant 0 : i32
    return %c0_i32, %c0_i32_0 : i32, i32
  }
  func.func @transform_6(%arg0: i32) -> (i32, i32) {
    %c0_i32 = arith.constant 0 : i32
    %c0_i32_0 = arith.constant 0 : i32
    %c0_i32_1 = arith.constant 0 : i32
    return %c0_i32, %c0_i32_0 : i32, i32
  }
  func.func @transform_7(%arg0: i32) -> (i32, i32) {
    %c0_i32 = arith.constant 0 : i32
    %c0_i32_0 = arith.constant 0 : i32
    return %arg0, %c0_i32 : i32, i32
  }
}

</mosaic_0001>

<bundles_post_ra>
// kernel: deterministic_policy_forward.1
= control target key start
LH: loop header
LB: loop body
LE: loop exit
PB: predicated region body
PF: predicated region fallthrough
CT: control target
= control target key end

     0   :  { %12 = vsyncpa [#allocation3], 0  ;;  %s1796_s0 = inlined_call_operand.vmem [shape: f32[48,8], index: 0, kind: input, shape index: {}]   ;;  %s1797_s1 = inlined_call_operand.vmem [shape: bf16[8,256], index: 1, kind: input, shape index: {}]   ;;  %s1798_s2 = inlined_call_operand.vmem [shape: f32[1,256], index: 2, kind: input, shape index: {}]   ;;  %s1799_s3 = inlined_call_operand.hbm [shape: bf16[256,256], index: 3, kind: input, shape index: {}]   ;;  %s1800_s4 = inlined_call_operand.vmem [shape: f32[1,256], index: 4, kind: input, shape index: {}]   ;;  %s1801_s5 = inlined_call_operand.hbm [shape: bf16[256,128], index: 5, kind: input, shape index: {}]   ;;  %s1802_s6 = inlined_call_operand.vmem [shape: f32[1,128], index: 6, kind: input, shape index: {}]   ;;  %s1803_s7 = inlined_call_operand.vmem [shape: f32[48,128], index: 7, kind: output, shape index: {}]  }
   0x1   :  { %13 = vsyncpa [#allocation5], 0  ;;  %s1641_s24 = smov 0   ;;  %s1643_s25 = smov 0  }
   0x2   :  { %s1645_s26 = smov 0  }
   0x3 LB: > { %s1654_s27 = sadd.s32 4294967295, %s1560_s26   ;;  %s1656_s28 = sadd.s32 1, %s1560_s26   ;;  %s1560_s26 = sphi %s1645_s26, %s1817_s26   ;;  %s1556_s25 = sphi %s1643_s25, %s1816_s25   ;;  %s1552_s24 = sphi %s1641_s24, %s1815_s24  }
   0x4   : > { %s175_s29 = ssub.s32 %s1560_s26, %s1656_s28  ;;  %s178_s30 = sadd.s32 1, %s1556_s25 }
   0x5   : > { %p176_p0 = scmp.eq.s32.totalorder %s175_s29, 0  ;;  %p188_p1 = scmp.ne.s32.totalorder %s1556_s25, %s1552_s24 }
   0x6   : > { %p189_p2 = scmp.eq.s32.totalorder %s1654_s27, 1  ;;  %p1146_p3 = scmp.ge.s32.totalorder %s1560_s26, 1 }
   0x7   : > { %s1664_s8 = scalar_select %p176_p0, %s1556_s25, %s178_s30  }
   0x8   : > { %p1666_p4 = por %p189_p2, %p188_p1  ;;  %p202_p5 = scmp.lt.s32.totalorder %s1560_s26, 3 }
   0x9   : > { %p1804_p6 = scmp.eq.s32.totalorder %s1654_s27, 0  ;;  %s1594_s11 = smov [#allocation2]  }
   0xa   : > { %p1671_p7 = pnand %p1146_p3, %p202_p5  ;;  %s220_s12 = sshll.u32 %s1594_s11, 4  ;;  %s221_s12 = int_to_ptr.vmem [resolvable:$true] %s220_s12 }
   0xb   : > { %s1595_s14 = smov [#allocation4]   ;;  %s1457_s16 = scalar_lea.vmem %s221_s12, 4096 }
   0xc   : > { %p1266_p8 = pneg %p1671_p7  ;;  %s236_s15 = sshll.u32 %s1595_s14, 4  ;;  %s237_s15 = int_to_ptr.vmem [resolvable:$true] %s236_s15 }
   0xd   : > { %p1458_p11 = scmp.ne.s32.totalorder %s221_s12, %s1457_s16  ;;  %p1465_p0 = scmp.lt.s32.totalorder %s221_s12, %s221_s12 }
   0xe   : > { %p1679_p9 = pnand %p1804_p6, %p1266_p8  ;;  %p1466_p1 = scmp.lt.s32.totalorder %s1457_s16, %s1457_s16 }
  0x10   : > { %p1448_p10 = pneg %p1679_p9  ;;  %p1467_p2 = por %p1466_p1, %p1465_p0 }
  0x12   : > { %p1460_p12 = pnand %p1458_p11, %p1448_p10 }
  0x14   : > { %p1461_p13 = pneg %p1460_p12 }
  0x16   : > { %p1468_p3 = pnand %p1467_p2, %p1461_p13 }
  0x18   : > { %1471 = shalt.err (!%p1468_p3)
}
  0x19   : > { %s1596_s17 = smov 128   ;;  %s1597_s18 = smov 8  }
  0x1a   : > { %1269 = dma.hbm_to_vmem [thread:$0]  (!%p1679_p9), %s1799_s3, 4096, %s221_s12, [#allocation3], %s1596_s17, %s1596_s17, %s1597_s18  }
  0x1b   : > { %s1483_s21 = scalar_lea.vmem %s237_s15, 2048  ;;  %p1491_p12 = scmp.lt.s32.totalorder %s237_s15, %s237_s15 }
  0x1c   : > { %p1484_p5 = scmp.ne.s32.totalorder %s237_s15, %s1483_s21  ;;  %p1492_p6 = scmp.lt.s32.totalorder %s1483_s21, %s1483_s21 }
  0x1e   : > { %p1486_p8 = pnand %p1484_p5, %p1448_p10  ;;  %p1493_p0 = por %p1492_p6, %p1491_p12 }
  0x20   : > { %p1487_p11 = pneg %p1486_p8 }
  0x22   : > { %p1494_p13 = pnand %p1493_p0, %p1487_p11 }
  0x24   : > { %1497 = shalt.err (!%p1494_p13)
}
  0x25   : > { %s1598_s22 = smov 64   ;;  %s1599_s23 = smov 4  }
  0x26   : > { %1272 = dma.hbm_to_vmem [thread:$0]  (!%p1679_p9), %s1801_s5, 2048, %s237_s15, [#allocation5], %s1598_s22, %s1598_s22, %s1599_s23  }
  0x27   : > { %272 = sbr.rel (%p1671_p7) target bundleno = 735 (0x2df), region = 48  ;;  %p1808_p1 = scmp.eq.s32.totalorder (!%p1671_p7), %s1654_s27, 0 }
  0x2c   : > { %1543 = dma.done.wait (%p1808_p1), [#allocation3], 4096   ;;  %p1809_p10 = pmov %p1808_p1 }
  0x2d   : > { %p1810_p6 = pmov %p1808_p1 }
  0x2e   : > { %1545 = vsyncadd (%p1809_p10), [#allocation3], 4294963200 }
  0x2f   : > { %1547 = dma.done.wait (%p1810_p6), [#allocation5], 2048   ;;  %p1811_p2 = pmov %p1808_p1 }
  0x30   : > { %s1712_s30 = sshll.u32 %s1654_s27, 2  ;;  %v1600_v0 = vmov 0   ;;  %v337_v1 = vld [vmem:[%s1797_s1] sm:$0xff]  ;;  %vm362_vm0 = vcmask 1043456   ;;  %v1374_v6 = vld [vmem:[#allocation2 + $0x74] ss:$8 sps:$4 sm:$0xff]   ;;  %v340_v53 = vlaneseq }
  0x31   : > { %1549 = vsyncadd (%p1811_p2), [#allocation5], 4294965248  ;;  %401 = vmatprep.mubr.bf16.mxu0 %v1600_v0  ;;  %p316_p7 = scmp.lt.s32.totalorder %s1712_s30, 5  ;;  %v1157_v4 = vcombine.high %v337_v1, %v337_v1  ;;  %v1156_v5 = vcombine.low %v337_v1, %v337_v1  ;;  %v1376_v7 = vld [vmem:[#allocation2 + $0x70] ss:$8 sps:$4 sm:$0xff]   ;;  %vm355_vm1 = vcmask 64512   ;;  %638 = vmatprep.subr.bf16.mxu1 %v1374_v6 }
  0x32   : > { %v1377_v10 = vld [vmem:[#allocation2 + $0x64] ss:$8 sps:$4 sm:$0xff]   ;;  %639 = vmatpush1.bf16.msra.mxu1 %v1376_v7  ;;  %v1379_v11 = vld [vmem:[#allocation2 + $0x60] ss:$8 sps:$4 sm:$0xff]   ;;  %v1380_v12 = vld [vmem:[#allocation2 + $0x54] ss:$8 sps:$4 sm:$0xff]  }
  0x33   : > { %s317_s10 = scalar_select %p316_p7, %s1712_s30, 5  ;;  %1158 = vmatprep.subr.msk.bf16.mxu0 %vm362_vm0, %v1157_v4  ;;  %v364_v8 = vsel %vm362_vm0, %v1156_v5, 0  ;;  %640 = vmatprep.subr.bf16.mxu1 %v1377_v10  ;;  %v1382_v15 = vld [vmem:[#allocation2 + $0x50] ss:$8 sps:$4 sm:$0xff]   ;;  %v1383_v16 = vld [vmem:[#allocation2 + $0x44] ss:$8 sps:$4 sm:$0xff]  }
  0x34   : > { %384 = vmatpush1.bf16.msra.mxu0 %v364_v8  ;;  %v1385_v18 = vld [vmem:[#allocation2 + $0x40] ss:$8 sps:$4 sm:$0xff]   ;;  %v1386_v19 = vld [vmem:[#allocation2 + $0x34] ss:$8 sps:$4 sm:$0xff]   ;;  %v1388_v20 = vld [vmem:[#allocation2 + $0x30] ss:$8 sps:$4 sm:$0xff]  }
  0x35   : > { %s1155_s11 = sshll.u32 %s317_s10, 3  ;;  %v1389_v21 = vld [vmem:[#allocation2 + $0x24] ss:$8 sps:$4 sm:$0xff]   ;;  %v1391_v22 = vld [vmem:[#allocation2 + $0x20] ss:$8 sps:$4 sm:$0xff]   ;;  %v1422_v43 = vld [vmem:[#allocation4 + $0x78] sm:$0xff]  }
  0x36   : > { %s319_s14 = scalar_lea.vmem %s1796_s0, %s1155_s11  ;;  %641 = vmatpush1.bf16.msra.mxu1 %v1379_v11  ;;  %v1392_v23 = vld [vmem:[#allocation2 + $0x14] ss:$8 sps:$4 sm:$0xff]   ;;  %v1394_v24 = vld [vmem:[#allocation2 + $0x10] ss:$8 sps:$4 sm:$0xff]   ;;  %v1395_v25 = vld [vmem:[#allocation2 + $0x4] ss:$8 sps:$4 sm:$0xff]   ;;  %1230 = vmatprep.subr.bf16.mxu0 %v1422_v43 }
  0x37   : > { %v331_v2 = vld [vmem:[%s319_s14] sm:$0xff]  ;;  %v332_v3 = vld [vmem:[%s319_s14 + $0x8] sm:$0xff]  ;;  %v333_v13 = vld [vmem:[%s319_s14 + $0x10] sm:$0xff]  ;;  %642 = vmatprep.subr.bf16.mxu1 %v1380_v12  ;;  %v341_v54 = vshrl.u32 %v340_v53, 7  ;;  %s308_s23 = sand.u32 1, %s1552_s24   ;;  %s903_s24 = ssub.s32 (%p1666_p4), 6, %s1712_s30 }
  0x38   : > { %v335_v9 = vpack.c.bf16 %v332_v3, %v331_v2  ;;  %v334_v14 = vld [vmem:[%s319_s14 + $0x18] sm:$0xff]  ;;  %v1397_v26 = vld [vmem:[#allocation2] ss:$8 sps:$4 sm:$0xff]   ;;  %v1401_v29 = vld [vmem:[#allocation2 + $0xe4] ss:$8 sps:$4 sm:$0xff]   ;;  %s1153_s26 = sshll.u32 %s308_s23, 5 }
  0x39   : > { %v336_v17 = vpack.c.bf16 %v334_v14, %v333_v13  ;;  %v1398_v27 = vld [vmem:[#allocation2 + $0xf4] ss:$8 sps:$4 sm:$0xff]   ;;  %v1400_v28 = vld [vmem:[#allocation2 + $0xf0] ss:$8 sps:$4 sm:$0xff]   ;;  %v1403_v30 = vld [vmem:[#allocation2 + $0xe0] ss:$8 sps:$4 sm:$0xff]  }
  0x3a   : > { %1159 = vmatmul.mubr.msk.bf16.vlgmr.msra.gmra.mxu0 %vm355_vm1, %v335_v9  ;;  %643 = vmatpush1.bf16.msra.mxu1 %v1382_v15  ;;  %v1404_v31 = vld [vmem:[#allocation2 + $0xd4] ss:$8 sps:$4 sm:$0xff]   ;;  %v1406_v32 = vld [vmem:[#allocation2 + $0xd0] ss:$8 sps:$4 sm:$0xff]   ;;  %v1407_v33 = vld [vmem:[#allocation2 + $0xc4] ss:$8 sps:$4 sm:$0xff]  }
  0x3b   : > { %411 = vmatprep.mubr.bf16.mxu0 %v1600_v0  ;;  %644 = vmatprep.subr.bf16.mxu1 %v1383_v16  ;;  %v1409_v34 = vld [vmem:[#allocation2 + $0xc0] ss:$8 sps:$4 sm:$0xff]   ;;  %v1410_v35 = vld [vmem:[#allocation2 + $0xb4] ss:$8 sps:$4 sm:$0xff]   ;;  %v1412_v36 = vld [vmem:[#allocation2 + $0xb0] ss:$8 sps:$4 sm:$0xff]  }
  0x3c   : > { %v1413_v37 = vld [vmem:[#allocation2 + $0xa4] ss:$8 sps:$4 sm:$0xff]   ;;  %v1415_v38 = vld [vmem:[#allocation2 + $0xa0] ss:$8 sps:$4 sm:$0xff]   ;;  %v1416_v39 = vld [vmem:[#allocation2 + $0x94] ss:$8 sps:$4 sm:$0xff]  }
  0x3d   : > { %v1418_v40 = vld [vmem:[#allocation2 + $0x90] ss:$8 sps:$4 sm:$0xff]   ;;  %v1419_v41 = vld [vmem:[#allocation2 + $0x84] ss:$8 sps:$4 sm:$0xff]   ;;  %v1421_v42 = vld [vmem:[#allocation2 + $0x80] ss:$8 sps:$4 sm:$0xff]  }
  0x3e   : > { %645 = vmatpush1.bf16.msra.mxu1 %v1385_v18  ;;  %v1423_v44 = vld [vmem:[#allocation4 + $0x38] sm:$0xff]   ;;  %v1424_v45 = vld [vmem:[#allocation4 + $0x70] sm:$0xff]   ;;  %v1426_v47 = vld [vmem:[#allocation4 + $0x68] sm:$0xff]   ;;  %v346_v55 = vsub.s32 1, %v341_v54  ;;  %v342_v56 = vsub.s32 0, %v341_v54  ;;  %s1734_s29 = scalar_lea.vmem [#allocation6], %s1153_s26  }
  0x3f   : > { %646 = vmatprep.subr.bf16.mxu1 %v1386_v19  ;;  %1231 = vmatpush3.bf16.msra.mxu0 %v1423_v44  ;;  %v1425_v46 = vld [vmem:[#allocation4 + $0x30] sm:$0xff]   ;;  %v1427_v48 = vld [vmem:[#allocation4 + $0x28] sm:$0xff]   ;;  %v1428_v49 = vld [vmem:[#allocation4 + $0x60] sm:$0xff]   ;;  %s1227_s10 = sshll.u32 (%p1666_p4), %s1654_s27, 5  ;;  %p904_p9 = scmp.lt.s32.totalorder (%p1666_p4), %s903_s24, 4 }
  0x40   : > { %1232 = vmatprep.subr.bf16.mxu0 %v1424_v45  ;;  %v1429_v50 = vld [vmem:[#allocation4 + $0x20] sm:$0xff]   ;;  %v1430_v51 = vld [vmem:[#allocation4 + $0x58] sm:$0xff]   ;;  %s1747_s13 = scalar_lea.vmem (%p1666_p4), %s1803_s7, %s1227_s10  }
  0x41   : > { %v1431_v52 = vld [vmem:[#allocation4 + $0x18] sm:$0xff]   ;;  %v338_v57 = vld [vmem:[%s1798_s2] sm:$0x3] }
  0x42   : > { %1160 = vmatmul.mubr.msk.bf16.gmra.mxu0 %vm355_vm1, %v336_v17  ;;  %647 = vmatpush1.bf16.msra.mxu1 %v1388_v20  ;;  %v347_v59 = vrot.slane %v338_v57, %v346_v55  ;;  %v343_v60 = vrot.slane %v338_v57, %v342_v56 }
  0x43   : > { %648 = vmatprep.subr.bf16.mxu1 %v1389_v21  ;;  %1233 = vmatpush3.bf16.msra.mxu0 %v1425_v46 }
  0x44   : > { %1234 = vmatprep.subr.bf16.mxu0 %v1426_v47 }
  0x46   : > { %649 = vmatpush1.bf16.msra.mxu1 %v1391_v22 }
  0x47   : > { %650 = vmatprep.subr.bf16.mxu1 %v1392_v23  ;;  %1235 = vmatpush3.bf16.msra.mxu0 %v1427_v48 }
  0x48   : > { %1236 = vmatprep.subr.bf16.mxu0 %v1428_v49 }
  0x4a   : > { %651 = vmatpush1.bf16.msra.mxu1 %v1394_v24  ;;  %v1432_v24 = vld [vmem:[#allocation4 + $0x50] sm:$0xff]  }
  0x4b   : > { %652 = vmatprep.subr.bf16.mxu1 %v1395_v25  ;;  %1237 = vmatpush3.bf16.msra.mxu0 %v1429_v50  ;;  %v1433_v25 = vld [vmem:[#allocation4 + $0x10] sm:$0xff]  }
  0x4c   : > { %1238 = vmatprep.subr.bf16.mxu0 %v1430_v51 }
  0x4e   : > { %653 = vmatpush1.bf16.msra.mxu1 %v1397_v26  ;;  %v1434_v26 = vld [vmem:[#allocation4 + $0x48] sm:$0xff]  }
  0x4f   : > { %654 = vmatprep.subr.bf16.mxu1 %v1398_v27  ;;  %1239 = vmatpush3.bf16.msra.mxu0 %v1431_v52  ;;  %v1435_v27 = vld [vmem:[#allocation4 + $0x8] sm:$0xff]  }
  0x50   : > { %1240 = vmatprep.subr.bf16.mxu0 %v1432_v24 }
  0x52   : > { %655 = vmatpush2.bf16.msra.mxu1 %v1400_v28  ;;  %v1436_v28 = vld [vmem:[#allocation4 + $0x40] sm:$0xff]  }
  0x53   : > { %656 = vmatprep.subr.bf16.mxu1 %v1401_v29  ;;  %1241 = vmatpush3.bf16.msra.mxu0 %v1433_v25  ;;  %v1437_v29 = vld [vmem:[#allocation4] sm:$0xff]  }
  0x54   : > { %1242 = vmatprep.subr.bf16.mxu0 %v1434_v26 }
  0x56   : > { %657 = vmatpush2.bf16.msra.mxu1 %v1403_v30  ;;  %v466_v30 = vld [vmem:[%s1800_s4] sm:$0x3] }
  0x57   : > { %658 = vmatprep.subr.bf16.mxu1 %v1404_v31  ;;  %1243 = vmatpush3.bf16.msra.mxu0 %v1435_v27 }
  0x58   : > { %1244 = vmatprep.subr.bf16.mxu0 %v1436_v28 }
  0x5a   : > { %659 = vmatpush2.bf16.msra.mxu1 %v1406_v32  ;;  %v475_v32 = vrot.slane %v466_v30, %v346_v55 }
  0x5b   : > { %660 = vmatprep.subr.bf16.mxu1 %v1407_v33  ;;  %1245 = vmatpush3.bf16.msra.mxu0 %v1437_v29  ;;  %v471_v33 = vrot.slane %v466_v30, %v342_v56 }
  0x5e   : > { %661 = vmatpush2.bf16.msra.mxu1 %v1409_v34 }
  0x5f   : > { %662 = vmatprep.subr.bf16.mxu1 %v1410_v35 }
  0x62   : > { %663 = vmatpush2.bf16.msra.mxu1 %v1412_v36 }
  0x63   : > { %664 = vmatprep.subr.bf16.mxu1 %v1413_v37 }
  0x66   : > { %665 = vmatpush2.bf16.msra.mxu1 %v1415_v38 }
  0x67   : > { %666 = vmatprep.subr.bf16.mxu1 %v1416_v39 }
  0x6a   : > { %667 = vmatpush2.bf16.msra.mxu1 %v1418_v40 }
  0x6b   : > { %668 = vmatprep.subr.bf16.mxu1 %v1419_v41 }
  0x6e   : > { %669 = vmatpush2.bf16.msra.mxu1 %v1421_v42 }
  0xfa   : > { %v403_v58 = vpop.f32.mrf.mxu0 }
  0xfb   : > { %v404_v1 = vadd.f32 %v403_v58, %v343_v60 }
  0xfc   : > { %v405_v61 = vpop.f32.mrf.mxu0 }
  0xfd   : > { %v406_v63 = vadd.f32 %v405_v61, %v347_v59  ;;  %v422_v8 = vmax.f32 %v404_v1, 0.0 }
  0xfe   : > { %v407_v62 = vpop.f32.mrf.mxu0 }
  0xff   : > { %v408_v0 = vadd.f32 %v407_v62, %v343_v60  ;;  %v423_v6 = vmax.f32 %v406_v63, 0.0  ;;  %v1193_v62 = vld [vmem:[%s1802_s6] ss:$0 sm:$0xff] }
 0x100   : > { %v409_v2 = vpop.f32.mrf.mxu0 }
 0x101   : > { %v410_v3 = vadd.f32 %v409_v2, %v347_v59  ;;  %v424_v4 = vmax.f32 %v408_v0, 0.0 }
 0x102   : > { %v413_v5 = vpop.f32.mrf.mxu0 }
 0x103   : > { %v425_v7 = vmax.f32 %v410_v3, 0.0  ;;  %v430_v11 = vpack.c.bf16 %v424_v4, %v422_v8  ;;  %v414_v15 = vadd.f32 %v413_v5, %v343_v60 }
 0x104   : > { %v415_v9 = vpop.f32.mrf.mxu0 }
 0x105   : > { %v431_v10 = vpack.c.bf16 %v425_v7, %v423_v6  ;;  %v416_v13 = vadd.f32 %v415_v9, %v347_v59  ;;  %v426_v21 = vmax.f32 %v414_v15, 0.0 }
 0x106   : > { %v417_v12 = vpop.f32.mrf.mxu0 }
 0x107   : > { %v418_v14 = vadd.f32 %v417_v12, %v343_v60  ;;  %670 = vmatprep.mubr.bf16.mxu1 %v431_v10  ;;  %v427_v19 = vmax.f32 %v416_v13, 0.0 }
 0x108   : > { %v419_v16 = vpop.f32.mrf.mxu0  ;;  %671 = vmatmul.mubr.bf16.vlgmr.msra.gmra.mxu1 %v430_v11 }
 0x109   : > { %v420_v17 = vadd.f32 %v419_v16, %v347_v59  ;;  %v428_v18 = vmax.f32 %v418_v14, 0.0 }
 0x10b   : > { %v429_v20 = vmax.f32 %v420_v17, 0.0  ;;  %v432_v23 = vpack.c.bf16 %v428_v18, %v426_v21 }
 0x10d   : > { %v433_v22 = vpack.c.bf16 %v429_v20, %v427_v19 }
 0x10f   : > { %680 = vmatprep.mubr.bf16.mxu1 %v433_v22 }
 0x110   : > { %681 = vmatmul.mubr.bf16.gmra.mxu1 %v432_v23 }
 0x1c8   : > { %v672_v31 = vpop.f32.mrf.mxu1 }
 0x1c9   : > { %v673_v38 = vadd.f32 %v672_v31, %v471_v33 }
 0x1ca   : > { %v674_v34 = vpop.f32.mrf.mxu1 }
 0x1cb   : > { %v675_v36 = vadd.f32 %v674_v34, %v475_v32  ;;  %v691_v45 = vmax.f32 %v673_v38, 0.0 }
 0x1cc   : > { %v676_v35 = vpop.f32.mrf.mxu1 }
 0x1cd   : > { %v677_v37 = vadd.f32 %v676_v35, %v471_v33  ;;  %v692_v43 = vmax.f32 %v675_v36, 0.0 }
 0x1ce   : > { %v678_v39 = vpop.f32.mrf.mxu1 }
 0x1cf   : > { %v679_v40 = vadd.f32 %v678_v39, %v475_v32  ;;  %v693_v41 = vmax.f32 %v677_v37, 0.0 }
 0x1d0   : > { %v682_v42 = vpop.f32.mrf.mxu1 }
 0x1d1   : > { %v694_v44 = vmax.f32 %v679_v40, 0.0  ;;  %v699_v48 = vpack.c.bf16 %v693_v41, %v691_v45  ;;  %v683_v52 = vadd.f32 %v682_v42, %v471_v33 }
 0x1d2   : > { %v684_v46 = vpop.f32.mrf.mxu1 }
 0x1d3   : > { %v700_v47 = vpack.c.bf16 %v694_v44, %v692_v43  ;;  %v685_v50 = vadd.f32 %v684_v46, %v475_v32  ;;  %v695_v58 = vmax.f32 %v683_v52, 0.0 }
 0x1d4   : > { %v686_v49 = vpop.f32.mrf.mxu1 }
 0x1d5   : > { %v687_v51 = vadd.f32 %v686_v49, %v471_v33  ;;  %870 = vmatprep.mubr.bf16.mxu0 %v700_v47  ;;  %v696_v56 = vmax.f32 %v685_v50, 0.0 }
 0x1d6   : > { %v688_v53 = vpop.f32.mrf.mxu1  ;;  %871 = vmatmul.mubr.bf16.vlgmr.msra.gmra.mxu0 %v699_v48 }
 0x1d7   : > { %v689_v54 = vadd.f32 %v688_v53, %v475_v32  ;;  %v697_v55 = vmax.f32 %v687_v51, 0.0 }
 0x1d9   : > { %v698_v57 = vmax.f32 %v689_v54, 0.0  ;;  %v701_v60 = vpack.c.bf16 %v697_v55, %v695_v58 }
 0x1db   : > { %v702_v59 = vpack.c.bf16 %v698_v57, %v696_v56 }
 0x1dd   : > { %878 = vmatprep.mubr.bf16.mxu0 %v702_v59 }
 0x1de   : > { %879 = vmatmul.mubr.bf16.gmra.mxu0 %v701_v60 }
 0x296   : > { %v1246_v61 = vpop.f32.mrf.mxu0 }
 0x298   : > { %v1247_v63 = vpop.f32.mrf.mxu0 }
 0x299   : > { %v1248_v0 = vadd.f32 %v1247_v63, %v1246_v61 }
 0x29a   : > { %v1249_v1 = vpop.f32.mrf.mxu0 }
 0x29b   : > { %v873_v2 = vadd.f32 %v1248_v0, %v1193_v62 }
 0x29c   : > { %v1250_v3 = vpop.f32.mrf.mxu0 }
 0x29d   : > { %1438 = vtanh.f32 %v873_v2  ;;  %v1251_v4 = vadd.f32 %v1250_v3, %v1249_v1 }
 0x29e   : > { %v1252_v5 = vpop.f32.mrf.mxu0 }
 0x29f   : > { %v876_v6 = vadd.f32 %v1251_v4, %v1193_v62 }
 0x2a0   : > { %v1253_v7 = vpop.f32.mrf.mxu0 }
 0x2a1   : > { %1440 = vtanh.f32 %v876_v6  ;;  %v1254_v8 = vadd.f32 %v1253_v7, %v1252_v5 }
 0x2a2   : > { %v1255_v9 = vpop.f32.mrf.mxu0 }
 0x2a3   : > { %v881_v10 = vadd.f32 %v1254_v8, %v1193_v62 }
 0x2a4   : > { %v1256_v11 = vpop.f32.mrf.mxu0 }
 0x2a5   : > { %1442 = vtanh.f32 %v881_v10  ;;  %v1257_v12 = vadd.f32 %v1256_v11, %v1255_v9 }
 0x2a7   : > { %v884_v13 = vadd.f32 %v1257_v12, %v1193_v62 }
 0x2a9   : > { %1444 = vtanh.f32 %v884_v13 }
 0x2aa   : > { %v1439_v14 = vpop.eup %1438 }
 0x2ab   : > { %891 = vst [vmem:[%s1734_s29] sm:$0xff] %v1439_v14 }
 0x2ae   : > { %v1441_v15 = vpop.eup %1440 }
 0x2af   : > { %892 = vst [vmem:[%s1734_s29 + $0x8] sm:$0xff] %v1441_v15 }
 0x2b2   : > { %v1443_v16 = vpop.eup %1442 }
 0x2b3   : > { %893 = vst [vmem:[%s1734_s29 + $0x10] sm:$0xff] %v1443_v16  ;;  %901 = sbr.rel (!%p1666_p4) target bundleno = 735 (0x2df), region = 60 }
 0x2b6   : > { %v1445_v17 = vpop.eup %1444 }
 0x2b7   : > { %894 = vst [vmem:[%s1734_s29 + $0x18] sm:$0xff] %v1445_v17 }
 0x2b8   : > { %s1819_s24 = smov (!%p904_p9, %s903_s24), 4 }
 0x2b9   : > { %s1212_s14 = sshll.u32 %s1819_s24, 7 }
 0x2ba   : > { %p1215_p3 = scmp.eq.s32.totalorder %s1212_s14, 0 }
 0x2bb   : > { %s1753_s15 = sshrl.u32 (!%p1215_p3), %s1819_s24, 2 }
 0x2bc   : > { %912 = sbr.rel (%p1215_p3) target bundleno = 735 (0x2df), region = 64  ;;  %p1216_p4 = scmp.le.s32.totalorder (!%p1215_p3), %s1753_s15, 0 }
 0x2c1   : > { %1083 = sbr.rel (%p1216_p4) target bundleno = 718 (0x2ce), region = 141  ;;  %s1812_s27 = smov (!%p1216_p4), %s1747_s13 }
 0x2c2   : > { %s1813_s9 = smov (!%p1216_p4), %s1734_s29  ;;  %s1762_s30 = smov (!%p1216_p4), 0  }
 0x2c3   : > { %s1574_s16 = smov (!%p1216_p4), 0  }
 0x2c6 LB: >> { %v981_v18 = vld [vmem:[%s1568_s9] sm:$0xff]  ;;  %v983_v19 = vld [vmem:[%s1568_s9 + $0x8] sm:$0xff]  ;;  %v985_v20 = vld [vmem:[%s1568_s9 + $0x10] sm:$0xff]  ;;  %s989_s17 = sadd.s32 1, %s1572_s30  ;;  %s975_s16 = sadd.s32 1, %s1576_s16   ;;  %s1576_s16 = sphi %s1574_s16, %s975_s16   ;;  %s1572_s30 = sphi %s1762_s30, %s1814_s30   ;;  %s1568_s9 = sphi %s1813_s9, %s994_s9   ;;  %s1564_s27 = sphi %s1812_s27, %s995_s27  }
 0x2c7   : >> { %982 = vst [vmem:[%s1564_s27] sm:$0xff] %v981_v18  ;;  %984 = vst [vmem:[%s1564_s27 + $0x8] sm:$0xff] %v983_v19  ;;  %v987_v21 = vld [vmem:[%s1568_s9 + $0x18] sm:$0xff]  ;;  %p990_p5 = scmp.ge.s32.totalorder %s989_s17, %s1753_s15  ;;  %p974_p8 = scmp.ge.s32.totalorder %s975_s16, %s1753_s15 }
 0x2c8   : >> { %986 = vst [vmem:[%s1564_s27 + $0x10] sm:$0xff] %v985_v20  ;;  %988 = vst [vmem:[%s1564_s27 + $0x18] sm:$0xff] %v987_v21 }
 0x2c9   : >> { %s1821_s17 = smov (%p990_p5, %s989_s17), 0  ;;  %977 = sbr.rel (!%p974_p8) target bundleno = 710 (0x2c6), region = 147 }
 0x2ca   : >> { %s1217_s18 = sshll.u32 %s1821_s17, 5  ;;  %s1814_s30 = smov %s1821_s17 }
 0x2cb   : >> { %s994_s9 = scalar_lea.vmem %s1734_s29, %s1217_s18 [#allocation6]   ;;  %s995_s27 = scalar_lea.vmem %s1747_s13, %s1217_s18  }
 0x2ce PF: > { %s1778_s19 = sand.u32 3, %s1819_s24   ;;  %s1228_s20 = sshll.u32 %s1753_s15, 5 }
 0x2cf   : > { %s1000_s21 = scalar_lea.vmem %s1734_s29, %s1228_s20 [#allocation6]   ;;  %s1002_s22 = scalar_lea.vmem %s1747_s13, %s1228_s20  }
 0x2d0   : > { %p1222_p11 = scmp.le.s32.totalorder %s1778_s19, 0 }
 0x2d1   : > { %s1578_s23 = smov (!%p1222_p11), %s1002_s22   ;;  %s1582_s26 = smov (!%p1222_p11), %s1000_s21  }
 0x2d2   : > { %1097 = sbr.rel (%p1222_p11) target bundleno = 735 (0x2df), region = 152  ;;  %s1586_s10 = smov (!%p1222_p11), 0  }
 0x2d3   : > { %s1590_s11 = smov (!%p1222_p11), 0  }
 0x2d7 LB: >> { %v1012_v22 = vld [vmem:[%s1584_s26] sm:$0xff]  ;;  %s1014_s24 = sadd.s32 1, %s1588_s10  ;;  %s1006_s11 = sadd.s32 1, %s1592_s11   ;;  %s1592_s11 = sphi %s1590_s11, %s1006_s11   ;;  %s1588_s10 = sphi %s1586_s10, %s1587_s10   ;;  %s1584_s26 = sphi %s1582_s26, %s1019_s26   ;;  %s1580_s23 = sphi %s1578_s23, %s1020_s23  }
 0x2d8   : >> { %1013 = vst [vmem:[%s1580_s23] sm:$0xff] %v1012_v22  ;;  %p1015_p12 = scmp.ge.s32.totalorder %s1014_s24, %s1778_s19  ;;  %p1005_p0 = scmp.ge.s32.totalorder %s1006_s11, %s1778_s19 }
 0x2da   : >> { %s1823_s24 = smov (%p1015_p12, %s1014_s24), 0  ;;  %1008 = sbr.rel (!%p1005_p0) target bundleno = 727 (0x2d7), region = 158 }
 0x2db   : >> { %s1223_s29 = sshll.u32 %s1823_s24, 3  ;;  %s1587_s10 = smov %s1823_s24  }
 0x2dc   : >> { %s1019_s26 = scalar_lea.vmem %s1000_s21, %s1223_s29 [#allocation6]   ;;  %s1020_s23 = scalar_lea.vmem %s1002_s22, %s1223_s29  }
 0x2df PF: > { %p16_p13 = scmp.ge.s32.totalorder %s1656_s28, 4   ;;  %s1815_s24 = smov %s1556_s25 }
 0x2e0   : > { %s1816_s25 = smov %s1664_s8  ;;  %s1817_s26 = smov %s1656_s28 }
 0x2e1   :  { %18 = sbr.rel (!%p16_p13) target bundleno = 3 (0x3), region = 169 }
 0x2e6   :  { %1036 = vsyncpa [#allocation3], 1 }
 0x2e7   :  { %1038 = vsyncpa [#allocation3 + $0x1], 1 }
 0x2e8   :  { %1039 = vsyncpa [#allocation5], 1 }

</bundles_post_ra>
